<compile_context>
chip_gen: v6e
topology: v6e:2x2x1
jax: 0.10.0
libtpu: 0.0.40
codegen_flags: <defaults>
</compile_context>

<pallas_src>
import jax
import jax.numpy as jnp
from jax.experimental import pallas as pl
from jax.experimental.pallas import tpu as pltpu

LN_EPS = 1e-5  # nn.LayerNorm default


def _patch_embed_kernel(x_ref, w_ref, p_ref, o_ref):
    # x_ref: (K, tm)  patch tokens, token-minor (lane-dense), bf16 or f32
    # w_ref: (D, K)   projection weight (conv weight reshaped, no transpose)
    # p_ref: (D, 3)   fused [conv_bias | ln_gamma | ln_beta] columns, f32
    # o_ref: (D, tm)  output block; maps directly onto NCHW memory
    y = jnp.dot(w_ref[...], x_ref[...], preferred_element_type=jnp.float32)
    y = y + p_ref[:, 0:1]                                     # conv bias

    # LayerNorm over embed_dim (sublane axis), single-pass f32 statistics:
    #   var = E[y^2] - mean^2  (post-matmul magnitudes -> no cancellation risk;
    #   clamped at 0 for safety).  Per-lane math, so padded columns of a ragged
    #   last tile compute garbage that is simply dropped on store.
    inv_d = 1.0 / y.shape[0]
    mean = jnp.sum(y, axis=0, keepdims=True) * inv_d          # (1, tm)
    mean_sq = jnp.sum(y * y, axis=0, keepdims=True) * inv_d   # (1, tm)
    var = jnp.maximum(mean_sq - mean * mean, 0.0)
    inv_std = jax.lax.rsqrt(var + LN_EPS)                     # (1, tm)
    out = (y - mean) * inv_std * p_ref[:, 1:2] + p_ref[:, 2:3]
    o_ref[...] = out.astype(o_ref.dtype)


def _choose_token_tile(ntok, batch, token_tile):
    """Token-tile width (the last, lane-dense dim of every block)."""
    if ntok > token_tile:
        # Lane-aligned tile; ragged last block handled by pl.cdiv grid.
        return max(128, (token_tile // 128) * 128)
    # Whole image fits in one tile.  On v7x (2 TensorCores) keep >= 2 parallel
    # grid points when the batch alone cannot provide them.
    if batch == 1 and ntok >= 256:
        return 128 * pl.cdiv(pl.cdiv(ntok, 2), 128)
    return ntok


def patch_embed_pallas(x, conv_w, conv_b, ln_gamma, ln_beta, patch_size, *,
                       token_tile=2048, compute_dtype=jnp.bfloat16,
                       out_dtype=None):
    """x: (B, C, H_in, W_in) NCHW.  conv_w: (D, C, p, p), conv_b/gamma/beta: (D,).

    Returns (B, D, H_in//p, W_in//p) NCHW, matching the PyTorch module.
    out_dtype defaults to compute_dtype (bf16) per the perf guidance; pass
    out_dtype=x.dtype for exact dtype parity with the PyTorch module.
    """
    B, C, Hin, Win = x.shape
    D = conv_w.shape[0]
    p = patch_size
    H, W = Hin // p, Win // p
    K = C * p * p
    ntok = H * W
    if out_dtype is None:
        out_dtype = compute_dtype if compute_dtype is not None else x.dtype

    tm = _choose_token_tile(ntok, B, token_tile)
    grid_t = pl.cdiv(ntok, tm)

    # Patch extraction, K-major / token-minor:
    #   xpT[b, (c,i,j), (h,w)] = x[b, c, h*p+i, w*p+j]
    # Materialized as ONE XLA transpose so per-block kernel DMAs are plain
    # 2-D strided slabs (predictable, no gather-slow fused reads).
    xpT = (x.reshape(B, C, H, p, W, p)
             .transpose(0, 1, 3, 5, 2, 4)
             .reshape(B, K, ntok))
    wd = conv_w.reshape(D, K)                 # (c,i,j) flattening matches xpT
    if compute_dtype is not None:
        xpT = xpT.astype(compute_dtype)
        wd = wd.astype(compute_dtype)
    params = jnp.stack([conv_b, ln_gamma, ln_beta], axis=1).astype(jnp.float32)

    out = pl.pallas_call(
        _patch_embed_kernel,
        out_shape=jax.ShapeDtypeStruct((B, D, ntok), out_dtype),
        grid_spec=pltpu.PrefetchScalarGridSpec(
            num_scalar_prefetch=0,
            grid=(B, grid_t),
            in_specs=[
                pl.BlockSpec((None, K, tm), lambda b, i: (b, 0, i)),
                pl.BlockSpec((D, K), lambda b, i: (0, 0)),
                pl.BlockSpec((D, 3), lambda b, i: (0, 0)),
            ],
            out_specs=pl.BlockSpec((None, D, tm), lambda b, i: (b, 0, i)),
        ),
        compiler_params=pltpu.CompilerParams(
            dimension_semantics=("parallel", "parallel"),
            vmem_limit_bytes=32 * 1024 * 1024,
        ),
    )(xpT, wd, params)

    # (B, D, H*W) -> (B, D, H, W): pure metadata reshape, already NCHW.
    return out.reshape(B, D, H, W)


def patch_embed_reference(x, conv_w, conv_b, ln_gamma, ln_beta, patch_size,
                          cast_dtype=None):
    """Plain-JAX reference mirroring the PyTorch forward.

    cast_dtype=bf16 reproduces the kernel's bf16-input / f32-accumulate path.
    """
    if cast_dtype is None:
        xc, wc = x, conv_w
    else:
        xc, wc = x.astype(cast_dtype), conv_w.astype(cast_dtype)
    y = jax.lax.conv_general_dilated(
        xc, wc,
        window_strides=(patch_size, patch_size),
        padding="VALID",
        dimension_numbers=("NCHW", "OIHW", "NCHW"),
        preferred_element_type=jnp.float32,
    ) + conv_b.reshape(1, -1, 1, 1)
    B, D, H, W = y.shape
    t = y.reshape(B, D, H * W).transpose(0, 2, 1)            # (B, HW, D)
    mean = jnp.mean(t, axis=-1, keepdims=True)
    var = jnp.mean((t - mean) ** 2, axis=-1, keepdims=True)
    t = (t - mean) / jnp.sqrt(var + LN_EPS) * ln_gamma + ln_beta
    return t.reshape(B, H, W, D).transpose(0, 3, 1, 2).astype(x.dtype)


if __name__ == "__main__":
    key = jax.random.PRNGKey(0)
    k_x, k_w, k_b, k_g, k_be = jax.random.split(key, 5)

    B, C, S = 2, 4, 16          # batch, in_channels, spatial
    patch_size = 4
    D = 32                      # embed_dim

    x = jax.random.normal(k_x, (B, C, S, S), dtype=jnp.float32)
    conv_w = jax.random.normal(k_w, (D, C, patch_size, patch_size), jnp.float32) * 0.05
    conv_b = jax.random.normal(k_b, (D,), jnp.float32) * 0.02
    ln_gamma = 1.0 + 0.1 * jax.random.normal(k_g, (D,), jnp.float32)
    ln_beta = 0.1 * jax.random.normal(k_be, (D,), jnp.float32)

    fn = jax.jit(lambda xx, ww, bb, gg, ee: patch_embed_pallas(
        xx, ww, bb, gg, ee, patch_size))
    out = jax.block_until_ready(fn(x, conv_w, conv_b, ln_gamma, ln_beta))

    H = W = S // patch_size
    assert out.shape == (B, D, H, W)
    out_f32 = out.astype(jnp.float32)

    # Matching-precision reference (same bf16 input rounding, f32 accumulate/LN);
    # tolerance also covers the bf16 rounding of the kernel's output store.
    ref_bf16 = patch_embed_reference(x, conv_w, conv_b, ln_gamma, ln_beta,
                                     patch_size, cast_dtype=jnp.bfloat16)
    assert jnp.allclose(out_f32, ref_bf16.astype(jnp.float32),
                        atol=3e-2, rtol=3e-2), "mismatch vs bf16 reference"

    # Full-f32 PyTorch-equivalent reference; loose tol covers the intentional
    # bf16 rounding of the matmul inputs and the bf16 output store.
    ref_f32 = patch_embed_reference(x, conv_w, conv_b, ln_gamma, ln_beta, patch_size)
    assert jnp.allclose(out_f32, ref_f32.astype(jnp.float32),
                        atol=1e-1, rtol=1e-1), "mismatch vs f32 reference"

    print("KERNEL_OK")
</pallas_src>

<mosaic_0001>
module attributes {stable_mosaic.version = 11 : i64} {
  func.func @_patch_embed_kernel(%arg0: i32, %arg1: i32, %arg2: memref<1x64x16xbf16, #tpu.memory_space<vmem>>, %arg3: memref<32x64xbf16, #tpu.memory_space<vmem>>, %arg4: memref<32x3xf32, #tpu.memory_space<vmem>>, %arg5: memref<1x32x16xbf16, #tpu.memory_space<vmem>>) attributes {dimension_semantics = [#tpu.dimension_semantics<parallel>, #tpu.dimension_semantics<parallel>], iteration_bounds = array<i64: 2, 1>, scalar_prefetch = 0 : i64, scratch_operands = 0 : i64, tpu.core_type = #tpu.core_type<tc>, window_params = [{transform_indices = @transform_0, window_bounds = array<i64: 1, 64, 16>}, {pipeline_mode = #tpu.pipeline_mode<synchronous>, transform_indices = @transform_1, window_bounds = array<i64: 32, 64>}, {pipeline_mode = #tpu.pipeline_mode<synchronous>, transform_indices = @transform_2, window_bounds = array<i64: 32, 3>}, {transform_indices = @transform_3, window_bounds = array<i64: 1, 32, 16>}]} {
    %c0 = arith.constant 0 : index
    %c0_0 = arith.constant 0 : index
    %0 = vector.load %arg3[%c0, %c0_0] : memref<32x64xbf16, #tpu.memory_space<vmem>>, vector<32x64xbf16>
    %c0_1 = arith.constant 0 : index
    %c0_2 = arith.constant 0 : index
    %c0_3 = arith.constant 0 : index
    %1 = vector.load %arg2[%c0_1, %c0_2, %c0_3] : memref<1x64x16xbf16, #tpu.memory_space<vmem>>, vector<1x64x16xbf16>
    %2 = vector.shape_cast %1 : vector<1x64x16xbf16> to vector<64x16xbf16>
    %cst = arith.constant dense<0.000000e+00> : vector<32x16xf32>
    %3 = tpu.matmul %0, %2, %cst {dimension_numbers = #tpu.dot_dimension_numbers<[1], [0], [0], [1], [0, 0, 1, 1], [], []>} : vector<32x64xbf16>, vector<64x16xbf16>, vector<32x16xf32> -> vector<32x16xf32>
    %c0_4 = arith.constant 0 : index
    %c0_5 = arith.constant 0 : index
    %4 = vector.load %arg4[%c0_4, %c0_5] : memref<32x3xf32, #tpu.memory_space<vmem>>, vector<32x1xf32>
    %5 = vector.broadcast %4 : vector<32x1xf32> to vector<32x16xf32>
    %6 = arith.addf %3, %5 : vector<32x16xf32>
    %cst_6 = arith.constant dense<0.000000e+00> : vector<16xf32>
    %7 = vector.multi_reduction <add>, %6, %cst_6 [0] : vector<32x16xf32> to vector<16xf32>
    %8 = vector.shape_cast %7 : vector<16xf32> to vector<1x16xf32>
    %cst_7 = arith.constant 3.125000e-02 : f32
    %9 = vector.broadcast %cst_7 : f32 to vector<1x16xf32>
    %10 = arith.mulf %8, %9 : vector<1x16xf32>
    %11 = arith.mulf %6, %6 : vector<32x16xf32>
    %cst_8 = arith.constant dense<0.000000e+00> : vector<16xf32>
    %12 = vector.multi_reduction <add>, %11, %cst_8 [0] : vector<32x16xf32> to vector<16xf32>
    %13 = vector.shape_cast %12 : vector<16xf32> to vector<1x16xf32>
    %cst_9 = arith.constant 3.125000e-02 : f32
    %14 = vector.broadcast %cst_9 : f32 to vector<1x16xf32>
    %15 = arith.mulf %13, %14 : vector<1x16xf32>
    %16 = arith.mulf %10, %10 : vector<1x16xf32>
    %17 = arith.subf %15, %16 : vector<1x16xf32>
    %cst_10 = arith.constant 0.000000e+00 : f32
    %18 = vector.broadcast %cst_10 : f32 to vector<1x16xf32>
    %19 = arith.maximumf %17, %18 : vector<1x16xf32>
    %cst_11 = arith.constant 9.99999974E-6 : f32
    %20 = vector.broadcast %cst_11 : f32 to vector<1x16xf32>
    %21 = arith.addf %19, %20 : vector<1x16xf32>
    %22 = math.rsqrt %21 : vector<1x16xf32>
    %23 = vector.broadcast %10 : vector<1x16xf32> to vector<32x16xf32>
    %24 = arith.subf %6, %23 : vector<32x16xf32>
    %25 = vector.broadcast %22 : vector<1x16xf32> to vector<32x16xf32>
    %26 = arith.mulf %24, %25 : vector<32x16xf32>
    %c0_12 = arith.constant 0 : index
    %c1 = arith.constant 1 : index
    %27 = vector.load %arg4[%c0_12, %c1] : memref<32x3xf32, #tpu.memory_space<vmem>>, vector<32x1xf32>
    %28 = vector.broadcast %27 : vector<32x1xf32> to vector<32x16xf32>
    %29 = arith.mulf %26, %28 : vector<32x16xf32>
    %c0_13 = arith.constant 0 : index
    %c2 = arith.constant 2 : index
    %30 = vector.load %arg4[%c0_13, %c2] : memref<32x3xf32, #tpu.memory_space<vmem>>, vector<32x1xf32>
    %31 = vector.broadcast %30 : vector<32x1xf32> to vector<32x16xf32>
    %32 = arith.addf %29, %31 : vector<32x16xf32>
    %33 = arith.truncf %32 : vector<32x16xf32> to vector<32x16xbf16>
    %c0_14 = arith.constant 0 : index
    %c0_15 = arith.constant 0 : index
    %c0_16 = arith.constant 0 : index
    %34 = vector.load %arg5[%c0_14, %c0_15, %c0_16] : memref<1x32x16xbf16, #tpu.memory_space<vmem>>, vector<1x32x16xbf16>
    %35 = vector.shape_cast %34 : vector<1x32x16xbf16> to vector<32x16xbf16>
    %36 = vector.shape_cast %33 : vector<32x16xbf16> to vector<1x32x16xbf16>
    tpu.vector_store %arg5[%c0_14, %c0_15, %c0_16], %36 {strides = array<i32>} : memref<1x32x16xbf16, #tpu.memory_space<vmem>>, vector<1x32x16xbf16>,
    return
  }
  func.func @transform_0(%arg0: i32, %arg1: i32) -> (i32, i32, i32) {
    %c0_i32 = arith.constant 0 : i32
    %c0_i32_0 = arith.constant 0 : i32
    return %arg0, %c0_i32, %arg1 : i32, i32, i32
  }
  func.func @transform_1(%arg0: i32, %arg1: i32) -> (i32, i32) {
    %c0_i32 = arith.constant 0 : i32
    %c0_i32_0 = arith.constant 0 : i32
    %c0_i32_1 = arith.constant 0 : i32
    return %c0_i32, %c0_i32_0 : i32, i32
  }
  func.func @transform_2(%arg0: i32, %arg1: i32) -> (i32, i32) {
    %c0_i32 = arith.constant 0 : i32
    %c0_i32_0 = arith.constant 0 : i32
    %c0_i32_1 = arith.constant 0 : i32
    return %c0_i32, %c0_i32_0 : i32, i32
  }
  func.func @transform_3(%arg0: i32, %arg1: i32) -> (i32, i32, i32) {
    %c0_i32 = arith.constant 0 : i32
    %c0_i32_0 = arith.constant 0 : i32
    return %arg0, %c0_i32, %arg1 : i32, i32, i32
  }
}

</mosaic_0001>

<bundles_post_ra>
// kernel: _lambda_.1
= control target key start
LH: loop header
LB: loop body
LE: loop exit
PB: predicated region body
PF: predicated region fallthrough
CT: control target
= control target key end

     0   :  { %s654_s12 = smov 0   ;;  %s656_s13 = smov 0   ;;  %s719_s0 = inlined_call_operand.vmem [shape: bf16[2,64,16], index: 0, kind: input, shape index: {}]   ;;  %s720_s1 = inlined_call_operand.vmem [shape: bf16[32,64], index: 1, kind: input, shape index: {}]   ;;  %s721_s2 = inlined_call_operand.vmem [shape: f32[32,3], index: 2, kind: input, shape index: {}]   ;;  %s722_s3 = inlined_call_operand.vmem [shape: bf16[2,32,16], index: 3, kind: output, shape index: {}]  }
   0x1   :  { %s658_s14 = smov 0  }
   0x2 LB: > { %s25_s15 = sadd.s32 1, %s625_s13  ;;  %p523_p0 = scmp.ge.s32.totalorder %s629_s14, 1  ;;  %s629_s14 = sphi %s658_s14, %s13_s14   ;;  %s625_s13 = sphi %s656_s13, %s724_s13   ;;  %s621_s12 = sphi %s654_s12, %s723_s12  }
   0x3   : > { %p27_p1 = scmp.ge.s32.totalorder %s25_s15, 2  ;;  %p156_p2 = scmp.lt.s32.totalorder %s629_s14, 3 }
   0x5   : > { %s726_s15 = smov (%p27_p1, %s25_s15), 0  ;;  %p157_p3 = pnand %p523_p0, %p156_p2 }
   0x6   : > { %p186_p4 = scmp.lt.s32.totalorder (!%p157_p3), %s621_s12, 1 }
   0x7   : > { %160 = sbr.rel (%p157_p3) target bundleno = 286 (0x11e), region = 32 }
   0xc   : > { %v603_v0 = vld [vmem:[%s720_s1] sm:$0xff]   ;;  %vm273_vm0 = vcmask 523264   ;;  %s728_s12 = smov (!%p186_p4, %s621_s12), 1  ;;  %v217_v2 = vld [vmem:[%s721_s2 + $0x10] sm:$0xff]  ;;  %v631_v3 = vmov 0   ;;  %v216_v4 = vld [vmem:[%s721_s2 + $0x8] sm:$0xff] }
   0xd   : > { %562 = vmatprep.mubr.msk.bf16.mxu0 %vm273_vm0, %v603_v0  ;;  %v215_v1 = vld [vmem:[%s721_s2] sm:$0xff]  ;;  %593 = vset.pattern.permute.xlu0 %v631_v3  ;;  %s542_s22 = sshll.u32 %s728_s12, 5  ;;  %v218_v5 = vld [vmem:[%s721_s2 + $0x18] sm:$0xff]  ;;  %v632_v9 = vmov 1   ;;  %v604_v11 = vld [vmem:[%s720_s1 + $0x8] sm:$0xff]   ;;  %v633_v12 = vmov 2  }
   0xe   : > { %594 = vset.pattern.permute.xlu1 %v631_v3  ;;  %221 = vperm.xlu0 %593, %v215_v1   ;;  %s193_s25 = scalar_lea.vmem %s719_s0, %s542_s22  ;;  %vm329_vm1 = vcmask 130048   ;;  %s543_s5 = sshll.u32 %s728_s12, 4  ;;  %vm431_vm2 = vcmask 125952  }
   0xf   : > { %231 = vperm.xlu1 %594, %v217_v2   ;;  %v599_v6 = vld [vmem:[%s193_s25 + $0x18] sm:$0xff]   ;;  %v600_v7 = vld [vmem:[%s193_s25 + $0x10] sm:$0xff]   ;;  %v601_v8 = vld [vmem:[%s193_s25 + $0x8] sm:$0xff]   ;;  %s201_s8 = scalar_lea.vmem %s722_s3, %s543_s5 }
  0x10   : > { %554 = vmatprep.subr.bf16.mxu0 %v599_v6  ;;  %v602_v10 = vld [vmem:[%s193_s25] sm:$0xff]  }
  0x11   : > { %555 = vmatpush3.bf16.msra.mxu0 %v599_v6 }
  0x12   : > { %226 = vperm.xlu0 %593, %v216_v4   ;;  %556 = vmatprep.subr.bf16.mxu0 %v600_v7 }
  0x13   : > { %236 = vperm.xlu1 %594, %v218_v5  }
  0x15   : > { %557 = vmatpush3.bf16.msra.mxu0 %v600_v7 }
  0x16   : > { %595 = vset.pattern.permute.xlu0 %v632_v9  ;;  %558 = vmatprep.subr.bf16.mxu0 %v601_v8 }
  0x17   : > { %596 = vset.pattern.permute.xlu1 %v632_v9  ;;  %376 = vperm.xlu0 %595, %v215_v1  }
  0x18   : > { %380 = vperm.xlu1 %596, %v216_v4  }
  0x19   : > { %559 = vmatpush3.bf16.msra.mxu0 %v601_v8 }
  0x1a   : > { %560 = vmatprep.subr.bf16.mxu0 %v602_v10 }
  0x1b   : > { %388 = vperm.xlu0 %595, %v218_v5  }
  0x1c   : > { %384 = vperm.xlu1 %596, %v217_v2  }
  0x1d   : > { %561 = vmatpush3.bf16.msra.mxu0 %v602_v10 }
  0x1f   : > { %598 = vset.pattern.permute.xlu0 %v633_v12 }
  0x20   : > { %597 = vset.pattern.permute.xlu1 %v633_v12  ;;  %563 = vmatmul.mubr.msk.bf16.vlgmr.msra.gmra.mxu0 %vm273_vm0, %v604_v11 }
  0x21   : > { %396 = vperm.xlu1 %597, %v215_v1   ;;  %400 = vperm.xlu0 %598, %v216_v4  }
  0x25   : > { %404 = vperm.xlu1 %597, %v217_v2  }
  0x29   : > { %408 = vperm.xlu1 %597, %v218_v5  }
  0x89   : > { %v222_v14 = vpop.permute.xlu0 %221 }
  0x8a   : > { %v232_v13 = vpop.permute.xlu1 %231 }
  0x8d   : > { %v227_v21 = vpop.permute.xlu0 %226 }
  0x8e   : > { %v237_v18 = vpop.permute.xlu1 %236 }
  0x92   : > { %v377_v0 = vpop.permute.xlu0 %376 }
  0x93   : > { %v381_v58 = vpop.permute.xlu1 %380 }
  0x96   : > { %v389_v2 = vpop.permute.xlu0 %388 }
  0x97   : > { %v385_v62 = vpop.permute.xlu1 %384 }
  0x9c   : > { %v397_v63 = vpop.permute.xlu1 %396  ;;  %v401_v12 = vpop.permute.xlu0 %400 }
  0xa0   : > { %v405_v1 = vpop.permute.xlu1 %404 }
  0xe0   : > { %v564_v15 = vpop.f32.mrf.mxu0 }
  0xe1   : > { %v323_v20 = vadd.f32 %v564_v15, %v232_v13 }
  0xe2   : > { %v314_v16 = vpop.f32.mrf.mxu0 }
  0xe3   : > { %v315_v17 = vadd.f32 %v314_v16, %v222_v14  ;;  %v346_v26 = vmul.f32 %v323_v20, %v323_v20  ;;  %v333_v31 = vsel %vm329_vm1, %v323_v20, 0.0 }
  0xe4   : > { %v565_v19 = vpop.f32.mrf.mxu0 }
  0xe5   : > { %v344_v23 = vmul.f32 %v315_v17, %v315_v17  ;;  %v326_v24 = vadd.f32 %v565_v19, %v237_v18  ;;  %v330_v27 = vsel %vm329_vm1, %v315_v17, 0.0  ;;  %v351_v37 = vsel %vm329_vm1, %v346_v26, 0.0  ;;  %v409_v18 = vpop.permute.xlu1 %408 }
  0xe6   : > { %v317_v22 = vpop.f32.mrf.mxu0 }
  0xe7   : > { %v318_v25 = vadd.f32 %v317_v22, %v227_v21  ;;  %v348_v32 = vsel %vm329_vm1, %v344_v23, 0.0  ;;  %v347_v33 = vmul.f32 %v326_v24, %v326_v24  ;;  %v335_v38 = vsel %vm329_vm1, %v326_v24, 0.0 }
  0xe9   : > { %v331_v28 = vsel %vm329_vm1, %v318_v25, 0.0  ;;  %v345_v29 = vmul.f32 %v318_v25, %v318_v25  ;;  %v353_v41 = vsel %vm329_vm1, %v347_v33, 0.0 }
  0xea   : > { %v332_v30 = vadd.f32 %v331_v28, %v330_v27 }
  0xeb   : > { %v349_v34 = vsel %vm329_vm1, %v345_v29, 0.0 }
  0xec   : > { %v334_v35 = vadd.f32 %v333_v31, %v332_v30  ;;  %v350_v36 = vadd.f32 %v349_v34, %v348_v32 }
  0xee   : > { %v336_v39 = vadd.f32 %v335_v38, %v334_v35  ;;  %v352_v40 = vadd.f32 %v351_v37, %v350_v36 }
  0xf0   : > { %v337_v42 = vrot.slane %v336_v39, 4  ;;  %v354_v43 = vadd.f32 %v353_v41, %v352_v40 }
  0xf2   : > { %v338_v44 = vadd.f32 %v337_v42, %v336_v39  ;;  %v355_v45 = vrot.slane %v354_v43, 4 }
  0xf4   : > { %v339_v46 = vrot.slane %v338_v44, 2  ;;  %v356_v47 = vadd.f32 %v355_v45, %v354_v43 }
  0xf6   : > { %v340_v48 = vadd.f32 %v339_v46, %v338_v44  ;;  %v357_v49 = vrot.slane %v356_v47, 2 }
  0xf8   : > { %v341_v50 = vrot.slane %v340_v48, 1  ;;  %v358_v51 = vadd.f32 %v357_v49, %v356_v47 }
  0xfa   : > { %v342_v52 = vadd.f32 %v341_v50, %v340_v48  ;;  %v359_v53 = vrot.slane %v358_v51, 1 }
  0xfc   : > { %v343_v54 = vmul.f32 0.03125, %v342_v52  ;;  %v360_v55 = vadd.f32 %v359_v53, %v358_v51 }
  0xfe   : > { %v361_v56 = vmul.f32 0.03125, %v360_v55  ;;  %v362_v57 = vmul.f32 %v343_v54, %v343_v54  ;;  %v368_v3 = vsub.f32 %v318_v25, %v343_v54  ;;  %v369_v4 = vsub.f32 %v323_v20, %v343_v54 }
  0xff   : > { %v367_v5 = vsub.f32 %v315_v17, %v343_v54  ;;  %v370_v6 = vsub.f32 %v326_v24, %v343_v54 }
 0x100   : > { %v363_v59 = vsub.f32 %v361_v56, %v362_v57 }
 0x102   : > { %v364_v60 = vmax.f32 %v363_v59, 0.0 }
 0x104   : > { %v365_v61 = vadd.f32 1e-05, %v364_v60 }
 0x106   : > { %605 = vrsqrt.f32 %v365_v61 }
 0x113   : > { %v606_v7 = vpop.eup %605 }
 0x114   : > { %v372_v8 = vmul.f32 %v606_v7, %v368_v3  ;;  %v373_v9 = vmul.f32 %v606_v7, %v369_v4  ;;  %v371_v10 = vmul.f32 %v606_v7, %v367_v5  ;;  %v374_v11 = vmul.f32 %v606_v7, %v370_v6 }
 0x116   : > { %v392_v13 = vmul.f32 %v381_v58, %v372_v8  ;;  %v393_v14 = vmul.f32 %v385_v62, %v373_v9  ;;  %v391_v15 = vmul.f32 %v377_v0, %v371_v10  ;;  %v394_v16 = vmul.f32 %v389_v2, %v374_v11 }
 0x118   : > { %v411_v19 = vadd.f32 %v397_v63, %v391_v15  ;;  %v413_v21 = vadd.f32 %v405_v1, %v393_v14  ;;  %v414_v22 = vadd.f32 %v409_v18, %v394_v16  ;;  %v412_v23 = vadd.f32 %v401_v12, %v392_v13 }
 0x11a   : > { %v544_v17 = vpack.c.bf16 %v411_v19, %v411_v19  ;;  %v546_v20 = vpack.c.bf16 %v413_v21, %v413_v21  ;;  %v547_v24 = vpack.c.bf16 %v414_v22, %v414_v22  ;;  %v545_v25 = vpack.c.bf16 %v412_v23, %v412_v23 }
 0x11c   : > { %432 = vst.msk [vmem:[%s201_s8] sm:$0xf] %vm431_vm2, %v544_v17  ;;  %434 = vst.msk [vmem:[%s201_s8 + $0x8] sm:$0xf] %vm431_vm2, %v546_v20 }
 0x11d   : > { %435 = vst.msk [vmem:[%s201_s8 + $0xc] sm:$0xf] %vm431_vm2, %v547_v24  ;;  %433 = vst.msk [vmem:[%s201_s8 + $0x4] sm:$0xf] %vm431_vm2, %v545_v25 }
 0x11e PF: > { %s13_s14 = sadd.s32 1, %s629_s14   ;;  %s723_s12 = smov %s625_s13 }
 0x11f   : > { %p10_p5 = scmp.ge.s32.totalorder %s13_s14, 4   ;;  %s724_s13 = smov %s726_s15 }
 0x121   :  { %12 = sbr.rel (!%p10_p5) target bundleno = 2 (0x2), region = 62 }

</bundles_post_ra>
